<compile_context>
chip_gen: v7x
topology: tpu7x:2x2x1
jax: 0.10.0
libtpu: 0.0.40
codegen_flags: <defaults>
</compile_context>

<pallas_src>
import jax
import jax.numpy as jnp
import numpy as np
from jax import lax
from jax.experimental import pallas as pl
from jax.experimental.pallas import tpu as pltpu


def _up_conv_kernel_aligned(params_ref, xw_ref, o_ref):
    """Fast path: W % 128 == 0 and Hs % 8 == 0.

    xw_ref: (bb, Hs, W) f32  -- column-doubled small image (W = 2*Ws)
    o_ref : (bb, Hs, 2W) f32 -- [output row 2i | output row 2i+1]
    """
    a = params_ref[0]
    b = params_ref[1]
    bias = -(a + 4.0 * b) * 0.5

    # Single full-block load; all neighbours come from rolls of this value,
    # so there are no overlapping shifted-slice temporaries.
    x = xw_ref[...]                               # (bb, Hs, W)
    hs = x.shape[-2]
    w = x.shape[-1]

    # Circular column neighbours: lane rolls (XLU).  Positive shifts only.
    left = pltpu.roll(x, 1, axis=2)               # x[:, :, j-1]
    right = pltpu.roll(x, w - 1, axis=2)          # x[:, :, j+1]
    base = (a + b) * x + b * (left + right) + bias

    # Circular row neighbours: sublane rolls.  Row 2i needs the row above,
    # row 2i+1 the row below.  Two static, aligned, lane-dense half stores.
    o_ref[:, :, :w] = base + b * pltpu.roll(x, 1, axis=1)       # rows 2i
    o_ref[:, :, w:] = base + b * pltpu.roll(x, hs - 1, axis=1)  # rows 2i+1


def _up_conv_kernel_small(params_ref, xs_ref, o_ref):
    """Robust fallback for lane-unaligned small lattices.

    xs_ref: (bb, Hs+2, 2W+2) f32 -- [xw | xw] with a 1-pixel circular halo
    o_ref : (bb, Hs, 2W)     f32 -- [output row 2i | output row 2i+1]
    """
    a = params_ref[0]
    b = params_ref[1]
    bias = -(a + 4.0 * b) * 0.5

    xs = xs_ref[...]                              # (bb, Hs+2, 2W+2)
    c = xs[:, 1:-1, 1:-1]                         # centre        (bb, Hs, 2W)
    lr = xs[:, 1:-1, :-2] + xs[:, 1:-1, 2:]       # left + right
    up = xs[:, :-2, 1:-1]                         # row above (circular)
    dn = xs[:, 2:, 1:-1]                          # row below (circular)

    base = (a + b) * c + b * lr + bias
    w = c.shape[-1] // 2
    col = lax.broadcasted_iota(jnp.int32, c.shape, 2)
    o_ref[...] = base + b * jnp.where(col < w, up, dn)


def decoder_nearest_neighbors_conv(x_nchw, params, *, batch_block=None):
    """x_nchw: (B, 1, Hs, Ws) float32; params: (2,) float32 -> (B, 1, 2Hs, 2Ws)."""
    B, C, Hs, Ws = x_nchw.shape
    assert C == 1, "only in_channels == 1 is supported"
    H, Wd = 2 * Hs, 2 * Ws                       # full-resolution height/width

    x = x_nchw[:, 0].astype(jnp.float32)         # (B, Hs, Ws)
    xw = jnp.repeat(x, 2, axis=-1)               # (B, Hs, Wd)  column-doubled

    aligned = (Wd % 128 == 0) and (Hs % 8 == 0)
    if aligned:
        staged = xw                                              # (B, Hs, Wd)
        in_block = (Hs, Wd)
        kernel = _up_conv_kernel_aligned
    else:
        # Proven codegen for tiny lattices: duplicated layout + wrap halo.
        staged = jnp.pad(jnp.concatenate([xw, xw], axis=-1),
                         ((0, 0), (1, 1), (1, 1)), mode="wrap")  # (B, Hs+2, 2Wd+2)
        in_block = (Hs + 2, 2 * Wd + 2)
        kernel = _up_conv_kernel_small

    # --- batch blocking: several grid steps (megacore sharding + DMA overlap),
    # per-step working set (double-buffered blocks + ~6 block-sized temps)
    # under a ~32 MiB budget that is safe on v5e/v6e/v7x.
    in_bytes = 4 * in_block[0] * in_block[1]
    out_bytes = 4 * Hs * 2 * Wd
    per_batch = 2 * (in_bytes + out_bytes) + 6 * in_bytes
    if batch_block is not None:
        bb = max(1, min(int(batch_block), B))
    else:
        budget = 32 * 2 ** 20
        bb = max(1, min(B, budget // max(per_batch, 1)))
        desired_steps = min(B, 8)
        bb = min(bb, max(1, B // desired_steps))
    while B % bb:
        bb -= 1
    grid = (B // bb,)

    vmem_limit = int(min(48 * 2 ** 20, max(16 * 2 ** 20, 2 * bb * per_batch)))

    cost = pl.CostEstimate(
        flops=int(6 * B * H * Wd),               # ~6 VPU ops per output element
        transcendentals=0,
        bytes_accessed=int(B * (in_bytes + out_bytes) + 8),
    )

    out = pl.pallas_call(
        kernel,
        out_shape=jax.ShapeDtypeStruct((B, Hs, 2 * Wd), jnp.float32),
        grid=grid,
        in_specs=[
            pl.BlockSpec(memory_space=pltpu.MemorySpace.SMEM),          # params (2,)
            pl.BlockSpec((bb,) + in_block, lambda g: (g, 0, 0)),        # staged image
        ],
        out_specs=pl.BlockSpec((bb, Hs, 2 * Wd), lambda g: (g, 0, 0)),
        compiler_params=pltpu.CompilerParams(
            dimension_semantics=("parallel",),
            vmem_limit_bytes=vmem_limit,
        ),
        cost_estimate=cost,
    )(params.astype(jnp.float32), staged)

    # (B, Hs, [row 2i | row 2i+1]) -> (B, 2Hs, 2Ws): free row-major reshape.
    return out.reshape(B, H, Wd)[:, None, :, :]


def _reference(x_nchw, params):
    """Pure-JAX reference for verification."""
    a, b = params[0], params[1]
    bias = -(a + 4.0 * b) * 0.5
    x = x_nchw[:, 0]
    x_up = jnp.repeat(jnp.repeat(x, 2, axis=1), 2, axis=2)
    c = x_up
    u = jnp.roll(x_up, 1, axis=1)
    d = jnp.roll(x_up, -1, axis=1)
    l = jnp.roll(x_up, 1, axis=2)
    r = jnp.roll(x_up, -1, axis=2)
    out = a * c + b * (u + d + l + r) + bias
    return out[:, None, :, :]


if __name__ == "__main__":
    key = jax.random.PRNGKey(0)
    k_small, k_big, k_p = jax.random.split(key, 3)

    # Matches torch.rand(2) init (uniform in [0, 1)), deterministic here.
    params = jax.random.uniform(k_p, (2,), dtype=jnp.float32)

    # 1) Small-lattice path (Ws=16 -> W=32, lane-unaligned -> robust fallback).
    x_small = jax.random.normal(k_small, (2, 1, 16, 16), dtype=jnp.float32)
    out_small = jax.block_until_ready(decoder_nearest_neighbors_conv(x_small, params))
    assert out_small.shape == (2, 1, 32, 32)
    np.testing.assert_allclose(np.asarray(out_small),
                               np.asarray(_reference(x_small, params)),
                               rtol=1e-5, atol=1e-5)

    # 2) Lane-aligned path (Ws=64 -> W=128): roll-based kernel, dense stores.
    x_big = jax.random.normal(k_big, (2, 1, 8, 64), dtype=jnp.float32)
    out_big = jax.block_until_ready(decoder_nearest_neighbors_conv(x_big, params))
    assert out_big.shape == (2, 1, 16, 128)
    np.testing.assert_allclose(np.asarray(out_big),
                               np.asarray(_reference(x_big, params)),
                               rtol=1e-5, atol=1e-5)

    print("KERNEL_OK")
</pallas_src>

<mosaic_0001>
module attributes {stable_mosaic.version = 11 : i64} {
  func.func @_up_conv_kernel_small(%arg0: i32, %arg1: memref<2xf32, #tpu.memory_space<smem>>, %arg2: memref<1x18x66xf32, #tpu.memory_space<vmem>>, %arg3: memref<1x16x64xf32, #tpu.memory_space<vmem>>) attributes {dimension_semantics = [#tpu.dimension_semantics<parallel>], iteration_bounds = array<i64: 2>, scalar_prefetch = 0 : i64, scratch_operands = 0 : i64, tpu.core_type = #tpu.core_type<tc>, window_params = [{transform_indices = @transform_0, window_bounds = array<i64: 2>}, {transform_indices = @transform_1, window_bounds = array<i64: 1, 18, 66>}, {transform_indices = @transform_2, window_bounds = array<i64: 1, 16, 64>}]} {
    %c0 = arith.constant 0 : index
    %0 = memref.load %arg1[%c0] : memref<2xf32, #tpu.memory_space<smem>>
    %c1 = arith.constant 1 : index
    %1 = memref.load %arg1[%c1] : memref<2xf32, #tpu.memory_space<smem>>
    %cst = arith.constant 4.000000e+00 : f32
    %2 = arith.mulf %cst, %1 : f32
    %3 = arith.addf %0, %2 : f32
    %cst_0 = arith.constant 0.000000e+00 : f32
    %4 = arith.subf %cst_0, %3 : f32
    %cst_1 = arith.constant 5.000000e-01 : f32
    %5 = arith.mulf %4, %cst_1 : f32
    %c0_2 = arith.constant 0 : index
    %c0_3 = arith.constant 0 : index
    %c0_4 = arith.constant 0 : index
    %6 = vector.load %arg2[%c0_2, %c0_3, %c0_4] : memref<1x18x66xf32, #tpu.memory_space<vmem>>, vector<1x18x66xf32>
    %7 = vector.extract_strided_slice %6 {offsets = [0, 1, 1], sizes = [1, 16, 64], strides = [1, 1, 1]} : vector<1x18x66xf32> to vector<1x16x64xf32>
    %8 = vector.extract_strided_slice %6 {offsets = [0, 1, 0], sizes = [1, 16, 64], strides = [1, 1, 1]} : vector<1x18x66xf32> to vector<1x16x64xf32>
    %9 = vector.extract_strided_slice %6 {offsets = [0, 1, 2], sizes = [1, 16, 64], strides = [1, 1, 1]} : vector<1x18x66xf32> to vector<1x16x64xf32>
    %10 = arith.addf %8, %9 : vector<1x16x64xf32>
    %11 = vector.extract_strided_slice %6 {offsets = [0, 0, 1], sizes = [1, 16, 64], strides = [1, 1, 1]} : vector<1x18x66xf32> to vector<1x16x64xf32>
    %12 = vector.extract_strided_slice %6 {offsets = [0, 2, 1], sizes = [1, 16, 64], strides = [1, 1, 1]} : vector<1x18x66xf32> to vector<1x16x64xf32>
    %13 = arith.addf %0, %1 : f32
    %14 = vector.broadcast %13 : f32 to vector<1x16x64xf32>
    %15 = arith.mulf %14, %7 : vector<1x16x64xf32>
    %16 = vector.broadcast %1 : f32 to vector<1x16x64xf32>
    %17 = arith.mulf %16, %10 : vector<1x16x64xf32>
    %18 = arith.addf %15, %17 : vector<1x16x64xf32>
    %19 = vector.broadcast %5 : f32 to vector<1x16x64xf32>
    %20 = arith.addf %18, %19 : vector<1x16x64xf32>
    %21 = tpu.iota {dimensions = array<i32: 2>} : vector<1x16x64xi32>
    %c32_i32 = arith.constant 32 : i32
    %22 = vector.broadcast %c32_i32 : i32 to vector<1x16x64xi32>
    %23 = arith.cmpi slt, %21, %22 : vector<1x16x64xi32>
    %24 = arith.select %23, %11, %12 : vector<1x16x64xi1>, vector<1x16x64xf32>
    %25 = vector.broadcast %1 : f32 to vector<1x16x64xf32>
    %26 = arith.mulf %25, %24 : vector<1x16x64xf32>
    %27 = arith.addf %20, %26 : vector<1x16x64xf32>
    %c0_5 = arith.constant 0 : index
    %c0_6 = arith.constant 0 : index
    %c0_7 = arith.constant 0 : index
    %28 = vector.load %arg3[%c0_5, %c0_6, %c0_7] : memref<1x16x64xf32, #tpu.memory_space<vmem>>, vector<1x16x64xf32>
    tpu.vector_store %arg3[%c0_5, %c0_6, %c0_7], %27 {strides = array<i32>} : memref<1x16x64xf32, #tpu.memory_space<vmem>>, vector<1x16x64xf32>,
    return
  }
  func.func @transform_0(%arg0: i32) -> i32 {
    %c0_i32 = arith.constant 0 : i32
    %c0_i32_0 = arith.constant 0 : i32
    return %c0_i32 : i32
  }
  func.func @transform_1(%arg0: i32) -> (i32, i32, i32) {
    %c0_i32 = arith.constant 0 : i32
    %c0_i32_0 = arith.constant 0 : i32
    %c0_i32_1 = arith.constant 0 : i32
    return %arg0, %c0_i32, %c0_i32_0 : i32, i32, i32
  }
  func.func @transform_2(%arg0: i32) -> (i32, i32, i32) {
    %c0_i32 = arith.constant 0 : i32
    %c0_i32_0 = arith.constant 0 : i32
    %c0_i32_1 = arith.constant 0 : i32
    return %arg0, %c0_i32, %c0_i32_0 : i32, i32, i32
  }
}

</mosaic_0001>

<bundles_post_ra>
// kernel: tpu_custom_call.1
= control target key start
LH: loop header
LB: loop body
LE: loop exit
PB: predicated region body
PF: predicated region fallthrough
CT: control target
= control target key end

     0   :  { %7 = vsyncpa [#allocation4], 0  ;;  %s666_s0 = inlined_call_operand.vmem [shape: f32[2], index: 0, kind: input, shape index: {}]   ;;  %s667_s1 = inlined_call_operand.vmem [shape: f32[2,18,66], index: 1, kind: input, shape index: {}]   ;;  %s668_s2 = inlined_call_operand.hbm [shape: f32[2,16,64], index: 2, kind: output, shape index: {}]  }
   0x1   :  { %8 = vsyncpa [#allocation3], 0 }
   0x2   :  { %10 = vsyncpa [#allocation3 + $0x1], 0  ;;  %s533_s9 = smov 0   ;;  %s535_s10 = smov 0  }
   0x3   :  { %s537_s11 = smov 0   ;;  %s539_s12 = smov 0  }
   0x4 LB: > { %s554_s13 = sadd.s32 4294967295, %s509_s12   ;;  %s357_s14 = sadd.s32 4294967294, %s509_s12   ;;  %s509_s12 = sphi %s539_s12, %s675_s12   ;;  %s505_s11 = sphi %s537_s11, %s674_s11   ;;  %s501_s10 = sphi %s535_s10, %s673_s10   ;;  %s497_s9 = sphi %s533_s9, %s672_s9  }
   0x5   : > { %s558_s15 = sadd.s32 1, %s509_s12   ;;  %s70_s16 = sadd.s32 1, %s505_s11 }
   0x6   : > { %s67_s17 = ssub.s32 %s509_s12, %s558_s15  ;;  %p80_p0 = scmp.ne.s32.totalorder %s505_s11, %s501_s10 }
   0x7   : > { %p68_p1 = scmp.eq.s32.totalorder %s67_s17, 0  ;;  %p81_p2 = scmp.eq.s32.totalorder %s554_s13, 1 }
   0x8   : > { %p86_p3 = scmp.ne.s32.totalorder %s501_s10, %s497_s9  ;;  %p87_p4 = scmp.eq.s32.totalorder %s357_s14, 1 }
   0x9   : > { %s569_s18 = scalar_select %p68_p1, %s505_s11, %s70_s16  }
   0xa   : > { %p571_p5 = por %p81_p2, %p80_p0  ;;  %p575_p6 = por %p87_p4, %p86_p3 }
   0xb   : > { %p358_p7 = scmp.ge.s32.totalorder %s509_s12, 1  ;;  %p94_p8 = scmp.lt.s32.totalorder %s509_s12, 3 }
   0xc   : > { %p387_p9 = scmp.eq.s32.totalorder %s554_s13, 0  ;;  %s107_s24 = sshll.u32 %s666_s0, 4  ;;  %s108_s24 = int_to_ptr.vmem [resolvable:$true] %s107_s24 }
   0xd   : > { %p582_p10 = pnand %p358_p7, %p94_p8  ;;  %s428_s25 = scalar_lea.vmem %s108_s24, 16 }
   0xe   : > { %p429_p13 = scmp.ne.s32.totalorder %s108_s24, %s428_s25  ;;  %p436_p3 = scmp.lt.s32.totalorder %s108_s24, %s108_s24 }
   0xf   : > { %p379_p11 = pneg %p582_p10  ;;  %p437_p4 = scmp.lt.s32.totalorder %s428_s25, %s428_s25 }
  0x11   : > { %p380_p12 = pnand %p387_p9, %p379_p11  ;;  %p438_p7 = por %p437_p4, %p436_p3 }
  0x13   : > { %p430_p0 = pneg %p380_p12 }
  0x15   : > { %p431_p1 = pnand %p430_p0, %p429_p13 }
  0x17   : > { %p432_p2 = pneg %p431_p1 }
  0x19   : > { %p439_p8 = pnand %p438_p7, %p432_p2 }
  0x1b   : > { %442 = shalt.err (!%p439_p8)
}
  0x1c   : > { %s511_s26 = smov [#allocation2]   ;;  %128 = sbr.rel (%p582_p10) target bundleno = 426 (0x1aa), region = 28 }
  0x1d   : > { %382 = dma.vmem_to_smem (!%p380_p12), %s108_s24, 16, %s511_s26, [#allocation4]  }
  0x23   : > { %488 = dma.done.wait (%p387_p9), [#allocation4], 16  }
  0x24   : > { %490 = vsyncadd (%p387_p9), [#allocation4], 4294967280 }
  0x25   : > { %134 = sfence }
  0x26   : > { %p151_p11 = scmp.lt.s32.totalorder %s554_s13, 1  ;;  %s512_s4 = smov 126   ;;  %vm217_vm0 = vcmask 1045504   ;;  %v208_v8 = vlaneseq  ;;  %vm235_vm2 = vcmask 1040384   ;;  %vm263_vm3 = vcmask 523265  }
  0x27   : > { %s513_s5 = smov 127   ;;  %s608_s6 = sld [smem:[#allocation2 + $0x1]]  ;;  %vm267_vm4 = vcmask 516096   ;;  %vm265_vm5 = vcmask 523264  }
  0x28   : > { %s152_s27 = scalar_select %p151_p11, %s554_s13, 1  ;;  %v209_v13 = vand.u32 127, %v208_v8 }
  0x29   : > { %s514_s7 = smov 1   ;;  %s156_s8 = sld [smem:[#allocation2]] }
  0x2a   : > { %s372_s28 = smul.u32 24, %s152_s27  ;;  %vm210_vm1 = vcmp.lt.s32.totalorder %v209_v13, 32  ;;  %s148_s23 = sand.u32 1, %s501_s10  }
  0x2b   : > { %s363_s24 = sshll.u32 %s148_s23, 4  ;;  %s371_s27 = sshll.u32 %s554_s13, 8 }
  0x2c   : > { %s155_s3 = scalar_lea.vmem %s667_s1, %s372_s28  ;;  %s150_s25 = scalar_lea.vmem [#allocation5], %s363_s24 }
  0x2d   : > { %v164_v0 = vld [vmem:[%s155_s3 + $0x10] sm:$0x3]  ;;  %v162_v1 = vld [vmem:[%s155_s3] sm:$0xff]  ;;  %v163_v2 = vld [vmem:[%s155_s3 + $0x8] sm:$0xff]  ;;  %v185_v9 = vstv %s608_s6  ;;  %s158_s14 = smul.f32 4.0, %s608_s6  ;;  %s283_s26 = sshll.u32 %s150_s25, 4  ;;  %s618_s26 = int_to_ptr.vmem [resolvable:$true] %s283_s26 }
  0x2e   : > { %172 = vrot.lane.b32.xlu1 %v164_v0, %s512_s4  ;;  %168 = vrot.lane.b32.xlu0 %v162_v1, %s512_s4  ;;  %v218_v3 = vrot.slane %v162_v1, 2  ;;  %v219_v4 = vrot.slane %v163_v2, 2  ;;  %v221_v6 = vrot.slane %v164_v0, 2  ;;  %s623_s30 = scalar_lea.hbm %s668_s2, %s371_s27  ;;  %s625_s3 = scalar_lea.sflag [#allocation3], %s148_s23 }
  0x2f   : > { %s180_s16 = sadd.f32 %s608_s6, %s156_s8  ;;  %s443_s13 = scalar_lea.vmem %s618_s26, 256 }
  0x30   : > { %v220_v5 = vsel %vm217_vm0, %v218_v3, %v219_v4  ;;  %v222_v7 = vsel %vm217_vm0, %v219_v4, %v221_v6  ;;  %s159_s17 = sadd.f32 %s158_s14, %s156_s8  ;;  %p444_p9 = scmp.ne.s32.totalorder %s618_s26, %s443_s13 }
  0x31   : > { %v181_v31 = vstv %s180_s16 }
  0x32   : > { %211 = vrot.lane.b32.xlu1 %v162_v1, %s513_s5  ;;  %170 = vrot.lane.b32.xlu0 %v163_v2, %s512_s4  ;;  %s160_s21 = ssub.f32 0.0, %s159_s17  ;;  %v182_v33 = vmul.f32 %v181_v31, %v162_v1  ;;  %v184_v36 = vmul.f32 %v181_v31, %v164_v0  ;;  %v183_v37 = vmul.f32 %v181_v31, %v163_v2  ;;  %p445_p10 = pnand %p444_p9, %p571_p5 }
  0x33   : > { %s515_s4 = smov [#allocation5]  }
  0x34   : > { %s161_s22 = smul.f32 0.5, %s160_s21  ;;  %p446_p12 = pneg %p445_p10 }
  0x36   : > { %213 = vrot.lane.b32.xlu0 %v163_v2, %s513_s5  ;;  %223 = vrot.lane.b32.xlu1 %v220_v5, %s513_s5  ;;  %v204_v39 = vstv %s161_s22 }
  0x3a   : > { %225 = vrot.lane.b32.xlu0 %v222_v7, %s513_s5 }
  0xa0   : > { %v173_v10 = vpop.permute.xlu1 %172  ;;  %v169_v11 = vpop.permute.xlu0 %168 }
  0xa1   : > { %v177_v12 = vadd.f32 %v169_v11, %v162_v1  ;;  %v179_v14 = vadd.f32 %v173_v10, %v164_v0 }
  0xa3   : > { %v186_v15 = vmul.f32 %v185_v9, %v177_v12  ;;  %v188_v19 = vmul.f32 %v185_v9, %v179_v14 }
  0xa4   : > { %v212_v16 = vpop.permute.xlu1 %211  ;;  %v171_v17 = vpop.permute.xlu0 %170 }
  0xa5   : > { %v178_v18 = vadd.f32 %v171_v17, %v163_v2  ;;  %192 = vrot.lane.b32.xlu1 %v186_v15, %s514_s7 }
  0xa7   : > { %v187_v20 = vmul.f32 %v185_v9, %v178_v18 }
  0xa8   : > { %v214_v21 = vpop.permute.xlu0 %213  ;;  %v224_v22 = vpop.permute.xlu1 %223 }
  0xa9   : > { %v229_v23 = vsel %vm210_vm1, %v212_v16, %v224_v22  ;;  %194 = vrot.lane.b32.xlu0 %v187_v20, %s514_s7  ;;  %196 = vrot.lane.b32.xlu1 %v188_v19, %s514_s7 }
  0xaa   : > { %v231_v24 = vmul.f32 %v229_v23, %v185_v9 }
  0xac   : > { %v236_v25 = vrot.slane %v231_v24, 7  ;;  %v226_v26 = vpop.permute.xlu0 %225 }
  0xad   : > { %v230_v27 = vsel %vm210_vm1, %v214_v21, %v226_v26 }
  0xae   : > { %v232_v28 = vmul.f32 %v230_v27, %v185_v9  ;;  %239 = vrot.lane.b32.xlu0 %v236_v25, %s514_s7 }
  0xb0   : > { %v237_v29 = vrot.slane %v232_v28, 7 }
  0xb2   : > { %243 = vrot.lane.b32.xlu0 %v237_v29, %s514_s7  ;;  %v238_v30 = vsel %vm235_vm2, %v236_v25, %v237_v29 }
  0xb3   : > { %241 = vrot.lane.b32.xlu1 %v238_v30, %s514_s7 }
 0x117   : > { %v193_v32 = vpop.permute.xlu1 %192 }
 0x118   : > { %v201_v34 = vadd.f32 %v193_v32, %v182_v33 }
 0x11a   : > { %v205_v41 = vadd.f32 %v204_v39, %v201_v34 }
 0x11b   : > { %v195_v35 = vpop.permute.xlu0 %194  ;;  %v197_v38 = vpop.permute.xlu1 %196 }
 0x11c   : > { %v203_v40 = vadd.f32 %v197_v38, %v184_v36  ;;  %v202_v42 = vadd.f32 %v195_v35, %v183_v37 }
 0x11e   : > { %v207_v45 = vadd.f32 %v204_v39, %v203_v40  ;;  %v206_v47 = vadd.f32 %v204_v39, %v202_v42 }
 0x120   : > { %v240_v43 = vpop.permute.xlu0 %239 }
 0x121   : > { %v248_v44 = vadd.f32 %v240_v43, %v205_v41 }
 0x123   : > { %254 = vrot.lane.b32.xlu1 %v248_v44, %s513_s5 }
 0x124   : > { %v244_v46 = vpop.permute.xlu0 %243 }
 0x125   : > { %v250_v48 = vadd.f32 %v244_v46, %v207_v45  ;;  %v242_v49 = vpop.permute.xlu1 %241 }
 0x126   : > { %v249_v50 = vadd.f32 %v242_v49, %v206_v47 }
 0x127   : > { %258 = vrot.lane.b32.xlu1 %v250_v48, %s513_s5 }
 0x128   : > { %256 = vrot.lane.b32.xlu0 %v249_v50, %s513_s5  ;;  %s447_s5 = sshll.u32 %s515_s4, 4  ;;  %s448_s5 = int_to_ptr.vmem [resolvable:$false] %s447_s5 }
 0x129   : > { %s449_s6 = scalar_lea.vmem %s448_s5, 512  ;;  %p450_p13 = scmp.lt.s32.totalorder %s618_s26, %s448_s5 }
 0x12a   : > { %p451_p0 = scmp.lt.s32.totalorder %s449_s6, %s443_s13 }
 0x12c   : > { %p452_p1 = por %p451_p0, %p450_p13 }
 0x12e   : > { %p453_p2 = pnand %p452_p1, %p446_p12 }
 0x195   : > { %v255_v51 = vpop.permute.xlu1 %254 }
 0x196   : > { %264 = vst.msk [vmem:[%s150_s25 - $0x1] sm:$0xfe] %vm263_vm3, %v255_v51 }
 0x199   : > { %v259_v52 = vpop.permute.xlu1 %258 }
 0x19a   : > { %268 = vst.msk [vmem:[%s150_s25 + $0xf] sm:$0x1] %vm267_vm4, %v259_v52  ;;  %v257_v53 = vpop.permute.xlu0 %256 }
 0x19b   : > { %266 = vst.msk [vmem:[%s150_s25 + $0x7] sm:$0xff] %vm265_vm5, %v257_v53 }
 0x19c   : > { %456 = shalt.err (!%p453_p2)
}
 0x19d   : > { %s457_s7 = scalar_lea.hbm %s623_s30, 256  ;;  %s461_s16 = scalar_lea.hbm %s668_s2, 512 }
 0x19e   : > { %p458_p3 = scmp.ne.s32.totalorder %s623_s30, %s457_s7  ;;  %p462_p8 = scmp.lt.u32.totalorder %s623_s30, %s668_s2 }
 0x19f   : > { %p463_p11 = scmp.lt.u32.totalorder %s461_s16, %s457_s7  ;;  %p465_p10 = scmp.lt.u32.totalorder %s457_s7, %s623_s30 }
 0x1a0   : > { %p459_p4 = pnand %p458_p3, %p571_p5 }
 0x1a1   : > { %p464_p9 = por %p463_p11, %p462_p8 }
 0x1a2   : > { %p460_p7 = pneg %p459_p4 }
 0x1a3   : > { %p466_p12 = por %p465_p10, %p464_p9 }
 0x1a5   : > { %p467_p13 = pnand %p466_p12, %p460_p7 }
 0x1a7   : > { %470 = shalt.err (!%p467_p13)
}
 0x1a8   : > { %s516_s22 = smov 128   ;;  %s517_s23 = smov 8  }
 0x1a9   : > { %377 = dma.vmem_to_hbm [thread:$0]  (%p571_p5), %s618_s26, 256, %s623_s30, %s625_s3, %s516_s22, %s516_s22, %s517_s23  }
 0x1aa PF: > { %p389_p0 = scmp.ge.s32.totalorder %s509_s12, 2  ;;  %s298_s24 = sand.u32 1, %s497_s9  }
 0x1ab   : > { %s299_s25 = scalar_lea.sflag [#allocation3], %s298_s24 }
 0x1ac   : > { %p384_p1 = pnand %p389_p0, %p575_p6 }
 0x1ae   : > { %492 = dma.done.wait (!%p384_p1), %s299_s25, 256  }
 0x1af   : > { %494 = vsyncadd (!%p384_p1), %s299_s25, 4294967040  ;;  %p13_p2 = scmp.ge.s32.totalorder %s558_s15, 4   ;;  %s672_s9 = smov %s501_s10 }
 0x1b0   : > { %s673_s10 = smov %s505_s11  ;;  %s674_s11 = smov %s569_s18 }
 0x1b1   : > { %s675_s12 = smov %s558_s15  ;;  %15 = sbr.rel (!%p13_p2) target bundleno = 4 (0x4), region = 68 }
 0x1b8   :  { %304 = vsyncpa [#allocation3], 1 }
 0x1b9   :  { %306 = vsyncpa [#allocation3 + $0x1], 1 }
 0x1ba   :  { %307 = vsyncpa [#allocation4], 1 }
 0x1bb   :  { %309 = vsyncpa [#allocation4 + $0x1], 1 }

</bundles_post_ra>
